<compile_context>
chip_gen: v7x
topology: tpu7x:2x2x1
jax: 0.10.0
libtpu: 0.0.40
codegen_flags: <defaults>
</compile_context>

<pallas_src>
import jax
import jax.numpy as jnp
from jax.experimental import pallas as pl
from jax.experimental.pallas import tpu as pltpu

IN_DIM = 3            # w has 3 components: 2 feature weights + bias
HID_DIM = 32          # hid_dim of ODEfunc (small, per instructions)
RK4_STEPS = 32        # fixed-step solver steps per time interval
MAX_BLOCK_ROWS = 4096  # 4096 rows x 128 lanes = 512K batch elems / block
                       # dense f32: (2 + 1) * 4096 * 128 * 4 B * 2 buffers ~= 12 MiB


def _round_up(a, m):
    return ((a + m - 1) // m) * m


# ------------------------------------------------------------------ parameters
def init_params(key, in_dim=IN_DIM, hid_dim=HID_DIM):
    k1, k2, k3 = jax.random.split(key, 3)
    return dict(
        w1=jax.random.normal(k1, (in_dim, hid_dim), jnp.float32) * 0.1,
        b1=jnp.zeros((hid_dim,), jnp.float32),
        w2=jax.random.normal(k2, (hid_dim, in_dim), jnp.float32) * 0.1,
        b2=jnp.zeros((in_dim,), jnp.float32),
        w0=jax.random.normal(k3, (1, in_dim), jnp.float32),   # torch.randn(1, 3)
    )


# ------------------------------------------------ Pallas kernel 1: RK4 ODEBlock
def _make_rk4_kernel(num_steps):
    def rk4_ode_kernel(dt_ref, w0_ref, w1_ref, b1_ref, w2t_ref, b2_ref, o_ref):
        # dt_ref : (1,)   f32 SMEM   step size
        # w0_ref : (3,1)  f32 VMEM   initial state (column)
        # w1_ref : (3,H)  f32 VMEM   Linear(3->H) weight
        # b1_ref : (1,H)  f32 VMEM
        # w2t_ref: (3,H)  f32 VMEM   Linear(H->3) weight, transposed
        # b2_ref : (3,1)  f32 VMEM
        # o_ref  : (3,1)  f32 VMEM   state at t1
        dt = dt_ref[0]
        half = dt * 0.5
        sixth = dt * (1.0 / 6.0)
        w1 = w1_ref[...]
        b1 = b1_ref[...]
        w2t = w2t_ref[...]
        b2 = b2_ref[...]

        def f(w):  # w: (3,1);  dw/dt = W2 @ tanh(W1^T w + b1) + b2
            h = jnp.tanh(jnp.sum(w * w1, axis=0, keepdims=True) + b1)   # (1,H)
            return jnp.sum(w2t * h, axis=-1, keepdims=True) + b2        # (3,1)

        def step(_, w):
            k1 = f(w)
            k2 = f(w + half * k1)
            k3 = f(w + half * k2)
            k4 = f(w + dt * k3)
            return w + sixth * (k1 + 2.0 * k2 + 2.0 * k3 + k4)

        o_ref[...] = jax.lax.fori_loop(0, num_steps, step, w0_ref[...])

    return rk4_ode_kernel


def rk4_integrate_pallas(params, w0, t0, t1, num_steps=RK4_STEPS):
    """Integrate dw/dt = ODEfunc(w) from t0 to t1; w0 and result shaped (1, 3)."""
    hid = params["w1"].shape[1]
    dt = (jnp.asarray(t1, jnp.float32) - jnp.asarray(t0, jnp.float32)) / num_steps
    dt = dt.reshape(1)
    w0c = jnp.asarray(w0, jnp.float32).reshape(IN_DIM, 1)
    w1 = params["w1"].astype(jnp.float32)
    b1 = params["b1"].astype(jnp.float32).reshape(1, hid)
    w2t = params["w2"].astype(jnp.float32).T
    b2 = params["b2"].astype(jnp.float32).reshape(IN_DIM, 1)

    out = pl.pallas_call(
        _make_rk4_kernel(num_steps),
        out_shape=jax.ShapeDtypeStruct((IN_DIM, 1), jnp.float32),
        in_specs=[
            pl.BlockSpec(memory_space=pltpu.MemorySpace.SMEM),   # dt
            pl.BlockSpec(memory_space=pltpu.MemorySpace.VMEM),   # w0
            pl.BlockSpec(memory_space=pltpu.MemorySpace.VMEM),   # w1
            pl.BlockSpec(memory_space=pltpu.MemorySpace.VMEM),   # b1
            pl.BlockSpec(memory_space=pltpu.MemorySpace.VMEM),   # w2^T
            pl.BlockSpec(memory_space=pltpu.MemorySpace.VMEM),   # b2
        ],
        out_specs=pl.BlockSpec(memory_space=pltpu.MemorySpace.VMEM),
    )(dt, w0c, w1, b1, w2t, b2)
    return out.reshape(1, IN_DIM)


def ode_block(params, w0, integration_times=None, num_steps=RK4_STEPS):
    # TODO(synk): torchdiffeq's adaptive-step odeint (rtol/atol=1e-3) is replaced
    # by fixed-step RK4 inside a single Pallas kernel.
    if integration_times is None:
        # state at t = 1 only (matches forward's wt = self.ode(...)[0] usage)
        return rk4_integrate_pallas(params, w0, 0.0, 1.0, num_steps)[None]
    times = jnp.asarray(integration_times, jnp.float32)
    # torchdiffeq convention: trajectory includes the state at times[0].
    outs = [jnp.asarray(w0, jnp.float32).reshape(1, IN_DIM)]
    w = outs[0]
    for i in range(1, int(times.shape[0])):
        w = rk4_integrate_pallas(params, w, times[i - 1], times[i], num_steps)
        outs.append(w)
    return jnp.stack(outs, axis=0)   # (len(times), 1, 3)


# --------------------------------- Pallas kernel 2: sigmoid([x, 1] @ wt.T) head
def logistic_head_kernel(wt_ref, x_ref, o_ref):
    # wt_ref: (3,) f32 SMEM -- [w_feat0, w_feat1, bias]
    # x_ref : (2, bR, 128)  -- feature-major, batch dense over sublanes x lanes
    # o_ref : (bR, 128) f32 -- sublane/lane-dense sigmoid output
    w0 = wt_ref[0]
    w1 = wt_ref[1]
    b = wt_ref[2]
    x0 = x_ref[0].astype(jnp.float32)
    x1 = x_ref[1].astype(jnp.float32)
    o_ref[...] = jax.nn.sigmoid(x0 * w0 + x1 * w1 + b)   # VPU FMAs + EUP sigmoid


def _choose_block_rows(n_rows):
    """Largest multiple-of-8 divisor of n_rows that fits the VMEM budget and
    leaves >= 2 grid steps when possible (so "parallel" feeds both v7x TCs)."""
    target = min(MAX_BLOCK_ROWS, n_rows)
    if n_rows >= 16:
        target = min(target, n_rows // 2)
    best = 8
    for d in range(8, target + 1, 8):
        if n_rows % d == 0:
            best = d
    return best


def logistic_head_pallas(wt, x):
    """sigmoid([x, 1] @ wt.T) for wt (1, 3) and x (n, 2) -> (n, 1)."""
    n = x.shape[0]
    n_pad = _round_up(max(n, 1), 1024)     # 8 sublanes x 128 lanes granularity
    n_rows = n_pad // 128                  # multiple of 8

    # Feature-major, sublane/lane-dense presentation.  Tail-only pad (no full
    # zero-init + scatter); the reshape to the 3-D tile layout is free.
    # TODO(synk): for very large n the (n,2)->(2,n) transpose could also be
    # removed by keeping x row-major interleaved and pair-summing in-kernel
    # with an alternating weight vector + pltpu.roll.
    x_t = x.T
    if n_pad != n:
        x_t = jnp.pad(x_t, ((0, 0), (0, n_pad - n)))
    x_t = x_t.reshape(2, n_rows, 128)

    wt_flat = wt.reshape(IN_DIM).astype(jnp.float32)

    block_rows = _choose_block_rows(n_rows)
    grid = (n_rows // block_rows,)

    probs = pl.pallas_call(
        logistic_head_kernel,
        out_shape=jax.ShapeDtypeStruct((n_rows, 128), jnp.float32),
        grid_spec=pltpu.PrefetchScalarGridSpec(
            num_scalar_prefetch=0,
            grid=grid,
            in_specs=[
                pl.BlockSpec(memory_space=pltpu.MemorySpace.SMEM),        # wt (3,)
                pl.BlockSpec((2, block_rows, 128), lambda i: (0, i, 0)),  # x block
            ],
            out_specs=pl.BlockSpec((block_rows, 128), lambda i: (i, 0)),
        ),
        compiler_params=pltpu.CompilerParams(
            dimension_semantics=("parallel",),
            vmem_limit_bytes=32 * 1024 * 1024,
        ),
    )(wt_flat, x_t)

    # Row-major (n_rows, 128) is exactly batch order -> reshape is free and the
    # prefix slice is cheap (free when n % 128 == 0).
    return probs.reshape(n_pad, 1)[:n]


# ---------------------------------------------------------------------- forward
def logistic_ode_forward(params, x, integration_times=None, regularization=False):
    wt_traj = ode_block(params, params["w0"], integration_times)
    if integration_times is not None:
        return wt_traj
    wt = wt_traj[0]                       # (1, 3) state at t = 1
    probs = logistic_head_pallas(wt, x)   # (n, 1)
    if regularization:
        return probs, (wt ** 2).sum()
    return probs


# -------------------------------------------------------------------- reference
def _reference_wt(params, num_steps=RK4_STEPS):
    def f(w):
        h = jnp.tanh(w @ params["w1"] + params["b1"])
        return h @ params["w2"] + params["b2"]

    dt = 1.0 / num_steps

    def step(_, w):
        k1 = f(w)
        k2 = f(w + dt * 0.5 * k1)
        k3 = f(w + dt * 0.5 * k2)
        k4 = f(w + dt * k3)
        return w + (dt / 6.0) * (k1 + 2.0 * k2 + 2.0 * k3 + k4)

    return jax.lax.fori_loop(0, num_steps, step, params["w0"])


def reference_forward(params, x):
    wt = _reference_wt(params)
    x_aug = jnp.concatenate([x, jnp.ones((x.shape[0], 1), x.dtype)], axis=1)
    return jax.nn.sigmoid(x_aug @ wt.T)


if __name__ == "__main__":
    key = jax.random.PRNGKey(0)
    pkey, xkey = jax.random.split(key)
    params = init_params(pkey, hid_dim=HID_DIM)

    batch = 200   # small; non-multiple of 128 to exercise padding + prefix slice
    x = jax.random.normal(xkey, (batch, 2), jnp.float32)

    forward = jax.jit(logistic_ode_forward)
    out = jax.block_until_ready(forward(params, x))

    ref = jax.block_until_ready(jax.jit(reference_forward)(params, x))
    assert out.shape == (batch, 1)
    assert jnp.allclose(out, ref, rtol=1e-3, atol=1e-3), float(
        jnp.max(jnp.abs(out - ref)))

    print("KERNEL_OK")
</pallas_src>

<mosaic_0001>
module attributes {stable_mosaic.version = 11 : i64} {
  func.func @rk4_ode_kernel(%arg0: memref<1xf32, #tpu.memory_space<smem>>, %arg1: memref<3x1xf32, #tpu.memory_space<vmem>>, %arg2: memref<3x32xf32, #tpu.memory_space<vmem>>, %arg3: memref<1x32xf32, #tpu.memory_space<vmem>>, %arg4: memref<3x32xf32, #tpu.memory_space<vmem>>, %arg5: memref<3x1xf32, #tpu.memory_space<vmem>>, %arg6: memref<3x1xf32, #tpu.memory_space<vmem>>) attributes {dimension_semantics = [], scalar_prefetch = 0 : i64, scratch_operands = 0 : i64, tpu.core_type = #tpu.core_type<tc>} {
    %c0 = arith.constant 0 : index
    %0 = memref.load %arg0[%c0] : memref<1xf32, #tpu.memory_space<smem>>
    %cst = arith.constant 5.000000e-01 : f32
    %1 = arith.mulf %0, %cst : f32
    %cst_0 = arith.constant 0.166666672 : f32
    %2 = arith.mulf %0, %cst_0 : f32
    %c0_1 = arith.constant 0 : index
    %c0_2 = arith.constant 0 : index
    %3 = vector.load %arg2[%c0_1, %c0_2] : memref<3x32xf32, #tpu.memory_space<vmem>>, vector<3x32xf32>
    %c0_3 = arith.constant 0 : index
    %c0_4 = arith.constant 0 : index
    %4 = vector.load %arg3[%c0_3, %c0_4] : memref<1x32xf32, #tpu.memory_space<vmem>>, vector<1x32xf32>
    %c0_5 = arith.constant 0 : index
    %c0_6 = arith.constant 0 : index
    %5 = vector.load %arg4[%c0_5, %c0_6] : memref<3x32xf32, #tpu.memory_space<vmem>>, vector<3x32xf32>
    %c0_7 = arith.constant 0 : index
    %c0_8 = arith.constant 0 : index
    %6 = vector.load %arg5[%c0_7, %c0_8] : memref<3x1xf32, #tpu.memory_space<vmem>>, vector<3x1xf32>
    %c0_9 = arith.constant 0 : index
    %c0_10 = arith.constant 0 : index
    %7 = vector.load %arg1[%c0_9, %c0_10] : memref<3x1xf32, #tpu.memory_space<vmem>>, vector<3x1xf32>
    %c0_i32 = arith.constant 0 : i32
    %c32_i32 = arith.constant 32 : i32
    %8 = arith.addi %c0_i32, %c32_i32 : i32
    %c1_i32 = arith.constant 1 : i32
    %9 = scf.for %arg7 = %c0_i32 to %8 step %c1_i32 iter_args(%arg8 = %7) -> (vector<3x1xf32>)  : i32 {
      %11 = vector.broadcast %arg8 : vector<3x1xf32> to vector<3x32xf32>
      %12 = arith.mulf %11, %3 : vector<3x32xf32>
      %cst_13 = arith.constant dense<0.000000e+00> : vector<32xf32>
      %13 = vector.multi_reduction <add>, %12, %cst_13 [0] : vector<3x32xf32> to vector<32xf32>
      %14 = vector.shape_cast %13 : vector<32xf32> to vector<1x32xf32>
      %15 = arith.addf %14, %4 : vector<1x32xf32>
      %16 = math.tanh %15 : vector<1x32xf32>
      %17 = vector.broadcast %16 : vector<1x32xf32> to vector<3x32xf32>
      %18 = arith.mulf %5, %17 : vector<3x32xf32>
      %cst_14 = arith.constant dense<0.000000e+00> : vector<3xf32>
      %19 = vector.multi_reduction <add>, %18, %cst_14 [1] : vector<3x32xf32> to vector<3xf32>
      %20 = vector.shape_cast %19 : vector<3xf32> to vector<3x1xf32>
      %21 = arith.addf %20, %6 : vector<3x1xf32>
      %22 = vector.broadcast %1 : f32 to vector<3x1xf32>
      %23 = arith.mulf %22, %21 : vector<3x1xf32>
      %24 = arith.addf %arg8, %23 : vector<3x1xf32>
      %25 = vector.broadcast %24 : vector<3x1xf32> to vector<3x32xf32>
      %26 = arith.mulf %25, %3 : vector<3x32xf32>
      %cst_15 = arith.constant dense<0.000000e+00> : vector<32xf32>
      %27 = vector.multi_reduction <add>, %26, %cst_15 [0] : vector<3x32xf32> to vector<32xf32>
      %28 = vector.shape_cast %27 : vector<32xf32> to vector<1x32xf32>
      %29 = arith.addf %28, %4 : vector<1x32xf32>
      %30 = math.tanh %29 : vector<1x32xf32>
      %31 = vector.broadcast %30 : vector<1x32xf32> to vector<3x32xf32>
      %32 = arith.mulf %5, %31 : vector<3x32xf32>
      %cst_16 = arith.constant dense<0.000000e+00> : vector<3xf32>
      %33 = vector.multi_reduction <add>, %32, %cst_16 [1] : vector<3x32xf32> to vector<3xf32>
      %34 = vector.shape_cast %33 : vector<3xf32> to vector<3x1xf32>
      %35 = arith.addf %34, %6 : vector<3x1xf32>
      %36 = vector.broadcast %1 : f32 to vector<3x1xf32>
      %37 = arith.mulf %36, %35 : vector<3x1xf32>
      %38 = arith.addf %arg8, %37 : vector<3x1xf32>
      %39 = vector.broadcast %38 : vector<3x1xf32> to vector<3x32xf32>
      %40 = arith.mulf %39, %3 : vector<3x32xf32>
      %cst_17 = arith.constant dense<0.000000e+00> : vector<32xf32>
      %41 = vector.multi_reduction <add>, %40, %cst_17 [0] : vector<3x32xf32> to vector<32xf32>
      %42 = vector.shape_cast %41 : vector<32xf32> to vector<1x32xf32>
      %43 = arith.addf %42, %4 : vector<1x32xf32>
      %44 = math.tanh %43 : vector<1x32xf32>
      %45 = vector.broadcast %44 : vector<1x32xf32> to vector<3x32xf32>
      %46 = arith.mulf %5, %45 : vector<3x32xf32>
      %cst_18 = arith.constant dense<0.000000e+00> : vector<3xf32>
      %47 = vector.multi_reduction <add>, %46, %cst_18 [1] : vector<3x32xf32> to vector<3xf32>
      %48 = vector.shape_cast %47 : vector<3xf32> to vector<3x1xf32>
      %49 = arith.addf %48, %6 : vector<3x1xf32>
      %50 = vector.broadcast %0 : f32 to vector<3x1xf32>
      %51 = arith.mulf %50, %49 : vector<3x1xf32>
      %52 = arith.addf %arg8, %51 : vector<3x1xf32>
      %53 = vector.broadcast %52 : vector<3x1xf32> to vector<3x32xf32>
      %54 = arith.mulf %53, %3 : vector<3x32xf32>
      %cst_19 = arith.constant dense<0.000000e+00> : vector<32xf32>
      %55 = vector.multi_reduction <add>, %54, %cst_19 [0] : vector<3x32xf32> to vector<32xf32>
      %56 = vector.shape_cast %55 : vector<32xf32> to vector<1x32xf32>
      %57 = arith.addf %56, %4 : vector<1x32xf32>
      %58 = math.tanh %57 : vector<1x32xf32>
      %59 = vector.broadcast %58 : vector<1x32xf32> to vector<3x32xf32>
      %60 = arith.mulf %5, %59 : vector<3x32xf32>
      %cst_20 = arith.constant dense<0.000000e+00> : vector<3xf32>
      %61 = vector.multi_reduction <add>, %60, %cst_20 [1] : vector<3x32xf32> to vector<3xf32>
      %62 = vector.shape_cast %61 : vector<3xf32> to vector<3x1xf32>
      %63 = arith.addf %62, %6 : vector<3x1xf32>
      %cst_21 = arith.constant 2.000000e+00 : f32
      %64 = vector.broadcast %cst_21 : f32 to vector<3x1xf32>
      %65 = arith.mulf %64, %35 : vector<3x1xf32>
      %66 = arith.addf %21, %65 : vector<3x1xf32>
      %cst_22 = arith.constant 2.000000e+00 : f32
      %67 = vector.broadcast %cst_22 : f32 to vector<3x1xf32>
      %68 = arith.mulf %67, %49 : vector<3x1xf32>
      %69 = arith.addf %66, %68 : vector<3x1xf32>
      %70 = arith.addf %69, %63 : vector<3x1xf32>
      %71 = vector.broadcast %2 : f32 to vector<3x1xf32>
      %72 = arith.mulf %71, %70 : vector<3x1xf32>
      %73 = arith.addf %arg8, %72 : vector<3x1xf32>
      scf.yield %73 : vector<3x1xf32>
    }
    %c0_11 = arith.constant 0 : index
    %c0_12 = arith.constant 0 : index
    %10 = vector.load %arg6[%c0_11, %c0_12] : memref<3x1xf32, #tpu.memory_space<vmem>>, vector<3x1xf32>
    tpu.vector_store %arg6[%c0_11, %c0_12], %9 {strides = array<i32>} : memref<3x1xf32, #tpu.memory_space<vmem>>, vector<3x1xf32>,
    return
  }
}

module attributes {stable_mosaic.version = 11 : i64} {
  func.func @logistic_head_kernel(%arg0: i32, %arg1: memref<3xf32, #tpu.memory_space<smem>>, %arg2: memref<2x8x128xf32, #tpu.memory_space<vmem>>, %arg3: memref<8x128xf32, #tpu.memory_space<vmem>>) attributes {dimension_semantics = [#tpu.dimension_semantics<parallel>], iteration_bounds = array<i64: 1>, scalar_prefetch = 0 : i64, scratch_operands = 0 : i64, tpu.core_type = #tpu.core_type<tc>, window_params = [{transform_indices = @transform_0, window_bounds = array<i64: 3>}, {transform_indices = @transform_1, window_bounds = array<i64: 2, 8, 128>}, {transform_indices = @transform_2, window_bounds = array<i64: 8, 128>}]} {
    %c0 = arith.constant 0 : index
    %0 = memref.load %arg1[%c0] : memref<3xf32, #tpu.memory_space<smem>>
    %c1 = arith.constant 1 : index
    %1 = memref.load %arg1[%c1] : memref<3xf32, #tpu.memory_space<smem>>
    %c2 = arith.constant 2 : index
    %2 = memref.load %arg1[%c2] : memref<3xf32, #tpu.memory_space<smem>>
    %c0_0 = arith.constant 0 : index
    %c0_1 = arith.constant 0 : index
    %c0_2 = arith.constant 0 : index
    %3 = vector.load %arg2[%c0_0, %c0_1, %c0_2] : memref<2x8x128xf32, #tpu.memory_space<vmem>>, vector<1x8x128xf32>
    %4 = vector.shape_cast %3 : vector<1x8x128xf32> to vector<8x128xf32>
    %c1_3 = arith.constant 1 : index
    %c0_4 = arith.constant 0 : index
    %c0_5 = arith.constant 0 : index
    %5 = vector.load %arg2[%c1_3, %c0_4, %c0_5] : memref<2x8x128xf32, #tpu.memory_space<vmem>>, vector<1x8x128xf32>
    %6 = vector.shape_cast %5 : vector<1x8x128xf32> to vector<8x128xf32>
    %7 = vector.broadcast %0 : f32 to vector<8x128xf32>
    %8 = arith.mulf %4, %7 : vector<8x128xf32>
    %9 = vector.broadcast %1 : f32 to vector<8x128xf32>
    %10 = arith.mulf %6, %9 : vector<8x128xf32>
    %11 = arith.addf %8, %10 : vector<8x128xf32>
    %12 = vector.broadcast %2 : f32 to vector<8x128xf32>
    %13 = arith.addf %11, %12 : vector<8x128xf32>
    %14 = arith.negf %13 : vector<8x128xf32>
    %15 = math.exp %14 : vector<8x128xf32>
    %cst = arith.constant 1.000000e+00 : f32
    %16 = vector.broadcast %cst : f32 to vector<8x128xf32>
    %17 = arith.addf %16, %15 : vector<8x128xf32>
    %18 = arith.divf %16, %17 : vector<8x128xf32>
    %c0_6 = arith.constant 0 : index
    %c0_7 = arith.constant 0 : index
    %19 = vector.load %arg3[%c0_6, %c0_7] : memref<8x128xf32, #tpu.memory_space<vmem>>, vector<8x128xf32>
    tpu.vector_store %arg3[%c0_6, %c0_7], %18 {strides = array<i32>} : memref<8x128xf32, #tpu.memory_space<vmem>>, vector<8x128xf32>,
    return
  }
  func.func @transform_0(%arg0: i32) -> i32 {
    %c0_i32 = arith.constant 0 : i32
    %c0_i32_0 = arith.constant 0 : i32
    return %c0_i32 : i32
  }
  func.func @transform_1(%arg0: i32) -> (i32, i32, i32) {
    %c0_i32 = arith.constant 0 : i32
    %c0_i32_0 = arith.constant 0 : i32
    %c0_i32_1 = arith.constant 0 : i32
    return %c0_i32, %arg0, %c0_i32_0 : i32, i32, i32
  }
  func.func @transform_2(%arg0: i32) -> (i32, i32) {
    %c0_i32 = arith.constant 0 : i32
    %c0_i32_0 = arith.constant 0 : i32
    return %arg0, %c0_i32 : i32, i32
  }
}

</mosaic_0001>

<bundles_post_ra>
// kernel: logistic_ode_forward.3
= control target key start
LH: loop header
LB: loop body
LE: loop exit
PB: predicated region body
PF: predicated region fallthrough
CT: control target
= control target key end

     0   :  { %7 = vsyncpa [#allocation3], 0  ;;  %s100_s0 = inlined_call_operand.vmem [shape: f32[3], index: 0, kind: input, shape index: {}]   ;;  %s101_s1 = inlined_call_operand.vmem [shape: f32[2,8,128], index: 1, kind: input, shape index: {}]   ;;  %s102_s2 = inlined_call_operand.vmem [shape: f32[8,128], index: 2, kind: output, shape index: {}]  }
   0x1   :  { %s14_s11 = sshll.u32 %s100_s0, 4  ;;  %s15_s11 = int_to_ptr.vmem [resolvable:$true] %s14_s11 }
   0x2   :  { %s58_s12 = scalar_lea.vmem %s15_s11, 16  ;;  %p63_p1 = scmp.lt.s32.totalorder %s15_s11, %s15_s11 }
   0x3   :  { %p59_p0 = scmp.ne.s32.totalorder %s15_s11, %s58_s12  ;;  %p64_p2 = scmp.lt.s32.totalorder %s58_s12, %s58_s12 }
   0x5   :  { %p65_p3 = por %p64_p2, %p63_p1 }
   0x7   :  { %p66_p4 = pnand %p65_p3, %p59_p0 }
   0x9   :  { %69 = shalt.err (!%p66_p4)
}
   0xa   :  { %s72_s13 = smov [#allocation2]  }
   0xb   :  { %17 = dma.vmem_to_smem %s15_s11, 16, %s72_s13, [#allocation3]  }
   0xc   :  { %70 = dma.done.wait [#allocation3], 16  }
   0xd   :  { %71 = vsyncadd [#allocation3], 4294967280 }
   0xe   :  { %23 = sfence }
   0xf   :  { %s24_s14 = sld [smem:[#allocation2]]  ;;  %s49_s15 = sld [smem:[#allocation2 + $0x1]]  ;;  %v27_v0 = vld [vmem:[%s101_s1] sm:$0xff]  ;;  %v51_v1 = vld [vmem:[%s101_s1 + $0x8] sm:$0xff] }
  0x10   :  { %s50_s16 = sld [smem:[#allocation2 + $0x2]] }
  0x15   :  { %v30_v2 = vstv %s24_s14  ;;  %v32_v3 = vstv %s49_s15 }
  0x16   :  { %v31_v4 = vmul.f32 %v30_v2, %v27_v0  ;;  %v33_v5 = vmul.f32 %v51_v1, %v32_v3  ;;  %v35_v6 = vstv %s50_s16 }
  0x18   :  { %v34_v7 = vadd.f32 %v33_v5, %v31_v4 }
  0x1a   :  { %v36_v8 = vadd.f32 %v35_v6, %v34_v7 }
  0x1c   :  { %v52_v9 = vmul.f32 -1.442695, %v36_v8 }
  0x1e   :  { %54 = vpow2.f32 %v52_v9 }
  0x28   :  { %v55_v10 = vpop.eup %54 }
  0x29   :  { %v40_v11 = vadd.f32 1.0, %v55_v10 }
  0x2b   :  { %56 = vrcp.f32 %v40_v11 }
  0x35   :  { %v57_v12 = vpop.eup %56 }
  0x36   :  { %43 = vst [vmem:[%s102_s2] sm:$0xff] %v57_v12 }
  0x37   :  { %48 = vsyncpa [#allocation3], 1 }

// kernel: logistic_ode_forward.2
= control target key start
LH: loop header
LB: loop body
LE: loop exit
PB: predicated region body
PF: predicated region fallthrough
CT: control target
= control target key end

     0   :  { %s338_s0 = inlined_call_operand.<no memory space> [shape: f32[1], index: 0, kind: input, shape index: {}]   ;;  %s339_s1 = inlined_call_operand.vmem [shape: f32[3,1], index: 1, kind: input, shape index: {}]   ;;  %s340_s2 = inlined_call_operand.vmem [shape: f32[3,32], index: 2, kind: input, shape index: {}]   ;;  %s341_s3 = inlined_call_operand.vmem [shape: f32[1,32], index: 3, kind: input, shape index: {}]   ;;  %s342_s4 = inlined_call_operand.vmem [shape: f32[3,32], index: 4, kind: input, shape index: {}]   ;;  %s343_s5 = inlined_call_operand.vmem [shape: f32[3,1], index: 5, kind: input, shape index: {}]   ;;  %s344_s6 = inlined_call_operand.vmem [shape: f32[3,1], index: 6, kind: output, shape index: {}]  }
   0x1   :  { %s25_s23 = smul.f32 0.5, %s338_s0  ;;  %v251_v0 = vld [vmem:[%s340_s2] sm:$0x7] }
   0x2   :  { %v256_v1 = vld [vmem:[%s341_s3] sm:$0x1]  ;;  %s26_s30 = smul.f32 0.16666667, %s338_s0  ;;  %s276_s3 = smov 0  }
   0x3   :  { %v264_v2 = vld [vmem:[%s342_s4] sm:$0x7] }
   0x4   :  { %v269_v3 = vld [vmem:[%s343_s5] sm:$0x7] }
   0x5   :  { %v31_v4 = vld [vmem:[%s339_s1] sm:$0x7]  }
   0x6 LB: > { %v209_v5 = vmov 0   ;;  %vm45_vm0 = vcmask 256000   ;;  %v55_v16 = vlaneseq  ;;  %v64_v23 = vstv %s25_s23  ;;  %s37_s3 = sadd.s32 1, %s207_s3   ;;  %s207_s3 = sphi %s276_s3, %s37_s3   ;;  %v203_v4 = vphi %v31_v4, %v345_v4  }
   0x7   : > { %183 = vset.pattern.permute.xlu0 %v209_v5  ;;  %184 = vset.pattern.permute.xlu1 %v209_v5  ;;  %v117_v61 = vstv %s338_s0  ;;  %p34_p0 = scmp.ge.s32.totalorder %s37_s3, 32  }
   0x8   : > { %41 = vperm.xlu0 %183, %v203_v4   ;;  %v56_v17 = vshrl.u32 %v55_v16, 7  ;;  %vm152_vm1 = vcmask (%p34_p0), 2048  }
   0xa   : > { %v288_v18 = vsub.s32 0, %v56_v17 }
  0x87   : > { %v42_v6 = vpop.permute.xlu0 %41 }
  0x88   : > { %v44_v7 = vmul.f32 %v42_v6, %v251_v0 }
  0x8a   : > { %v46_v8 = vsel %vm45_vm0, %v44_v7, 0.0 }
  0x8b   : > { %v47_v9 = vrot.slane %v46_v8, 4 }
  0x8d   : > { %v48_v10 = vadd.f32 %v47_v9, %v46_v8 }
  0x8f   : > { %v49_v11 = vrot.slane %v48_v10, 2 }
  0x91   : > { %v50_v12 = vadd.f32 %v49_v11, %v48_v10 }
  0x93   : > { %v51_v13 = vrot.slane %v50_v12, 1 }
  0x95   : > { %v52_v14 = vadd.f32 %v51_v13, %v50_v12 }
  0x97   : > { %v53_v15 = vadd.f32 %v52_v14, %v256_v1 }
  0x99   : > { %185 = vtanh.f32 %v53_v15 }
  0xa3   : > { %v186_v19 = vpop.eup %185 }
  0xa4   : > { %v58_v20 = vrot.slane %v186_v19, %v288_v18 }
  0xa6   : > { %v59_v21 = vmul.f32 %v58_v20, %v264_v2 }
  0xa8   : > { %v60_v22 = vsel %vm45_vm0, %v59_v21, 0.0 }
  0xa9   : > { %61 = vadd.xlane.f32.xlu0 %v60_v22 }
 0x136   : > { %v62_v24 = vpop.xlane.xlu0 %61 }
 0x137   : > { %v63_v25 = vadd.f32 %v62_v24, %v269_v3 }
 0x139   : > { %v65_v26 = vmul.f32 %v64_v23, %v63_v25 }
 0x13b   : > { %v66_v27 = vadd.f32 %v203_v4, %v65_v26 }
 0x13d   : > { %69 = vperm.xlu1 %184, %v66_v27   ;;  %v149_v27 = vstv %s26_s30 }
 0x1bc   : > { %v70_v28 = vpop.permute.xlu1 %69 }
 0x1bd   : > { %v72_v29 = vmul.f32 %v70_v28, %v251_v0 }
 0x1bf   : > { %v73_v30 = vsel %vm45_vm0, %v72_v29, 0.0 }
 0x1c0   : > { %v74_v31 = vrot.slane %v73_v30, 4 }
 0x1c2   : > { %v75_v32 = vadd.f32 %v74_v31, %v73_v30 }
 0x1c4   : > { %v76_v33 = vrot.slane %v75_v32, 2 }
 0x1c6   : > { %v77_v34 = vadd.f32 %v76_v33, %v75_v32 }
 0x1c8   : > { %v78_v35 = vrot.slane %v77_v34, 1 }
 0x1ca   : > { %v79_v36 = vadd.f32 %v78_v35, %v77_v34 }
 0x1cc   : > { %v80_v37 = vadd.f32 %v79_v36, %v256_v1 }
 0x1ce   : > { %187 = vtanh.f32 %v80_v37 }
 0x1d8   : > { %v188_v38 = vpop.eup %187 }
 0x1d9   : > { %v85_v39 = vrot.slane %v188_v38, %v288_v18 }
 0x1db   : > { %v86_v40 = vmul.f32 %v85_v39, %v264_v2 }
 0x1dd   : > { %v87_v41 = vsel %vm45_vm0, %v86_v40, 0.0 }
 0x1de   : > { %88 = vadd.xlane.f32.xlu1 %v87_v41 }
 0x26b   : > { %v89_v42 = vpop.xlane.xlu1 %88 }
 0x26c   : > { %v90_v43 = vadd.f32 %v89_v42, %v269_v3 }
 0x26e   : > { %v91_v44 = vmul.f32 %v90_v43, %v64_v23  ;;  %v144_v60 = vmul.f32 2.0, %v90_v43 }
 0x270   : > { %v92_v45 = vadd.f32 %v203_v4, %v91_v44  ;;  %v145_v5 = vadd.f32 %v144_v60, %v63_v25 }
 0x272   : > { %95 = vperm.xlu0 %183, %v92_v45  }
 0x2f1   : > { %v96_v46 = vpop.permute.xlu0 %95 }
 0x2f2   : > { %v98_v47 = vmul.f32 %v96_v46, %v251_v0 }
 0x2f4   : > { %v99_v48 = vsel %vm45_vm0, %v98_v47, 0.0 }
 0x2f5   : > { %v100_v49 = vrot.slane %v99_v48, 4 }
 0x2f7   : > { %v101_v50 = vadd.f32 %v100_v49, %v99_v48 }
 0x2f9   : > { %v102_v51 = vrot.slane %v101_v50, 2 }
 0x2fb   : > { %v103_v52 = vadd.f32 %v102_v51, %v101_v50 }
 0x2fd   : > { %v104_v53 = vrot.slane %v103_v52, 1 }
 0x2ff   : > { %v105_v54 = vadd.f32 %v104_v53, %v103_v52 }
 0x301   : > { %v106_v55 = vadd.f32 %v105_v54, %v256_v1 }
 0x303   : > { %189 = vtanh.f32 %v106_v55 }
 0x30d   : > { %v190_v56 = vpop.eup %189 }
 0x30e   : > { %v111_v57 = vrot.slane %v190_v56, %v288_v18 }
 0x310   : > { %v112_v58 = vmul.f32 %v111_v57, %v264_v2 }
 0x312   : > { %v113_v59 = vsel %vm45_vm0, %v112_v58, 0.0 }
 0x313   : > { %114 = vadd.xlane.f32.xlu1 %v113_v59 }
 0x3a0   : > { %v115_v62 = vpop.xlane.xlu1 %114 }
 0x3a1   : > { %v116_v63 = vadd.f32 %v115_v62, %v269_v3 }
 0x3a3   : > { %v118_v6 = vmul.f32 %v117_v61, %v116_v63  ;;  %v146_v7 = vmul.f32 2.0, %v116_v63 }
 0x3a5   : > { %v119_v8 = vadd.f32 %v203_v4, %v118_v6  ;;  %v147_v9 = vadd.f32 %v146_v7, %v145_v5 }
 0x3a7   : > { %122 = vperm.xlu1 %184, %v119_v8  }
 0x426   : > { %v123_v10 = vpop.permute.xlu1 %122 }
 0x427   : > { %v125_v11 = vmul.f32 %v123_v10, %v251_v0 }
 0x429   : > { %v126_v12 = vsel %vm45_vm0, %v125_v11, 0.0 }
 0x42a   : > { %v127_v13 = vrot.slane %v126_v12, 4 }
 0x42c   : > { %v128_v14 = vadd.f32 %v127_v13, %v126_v12 }
 0x42e   : > { %v129_v15 = vrot.slane %v128_v14, 2 }
 0x430   : > { %v130_v16 = vadd.f32 %v129_v15, %v128_v14 }
 0x432   : > { %v131_v17 = vrot.slane %v130_v16, 1 }
 0x434   : > { %v132_v19 = vadd.f32 %v131_v17, %v130_v16 }
 0x436   : > { %v133_v20 = vadd.f32 %v132_v19, %v256_v1 }
 0x438   : > { %191 = vtanh.f32 %v133_v20 }
 0x442   : > { %v192_v21 = vpop.eup %191 }
 0x443   : > { %v138_v22 = vrot.slane %v192_v21, %v288_v18 }
 0x445   : > { %v139_v23 = vmul.f32 %v138_v22, %v264_v2 }
 0x447   : > { %v140_v24 = vsel %vm45_vm0, %v139_v23, 0.0 }
 0x448   : > { %141 = vadd.xlane.f32.xlu0 %v140_v24 }
 0x4d5   : > { %v142_v25 = vpop.xlane.xlu0 %141 }
 0x4d6   : > { %v143_v26 = vadd.f32 %v142_v25, %v269_v3 }
 0x4d8   : > { %v148_v28 = vadd.f32 %v147_v9, %v143_v26  ;;  %36 = sbr.rel (!%p34_p0) target bundleno = 6 (0x6), region = 51 }
 0x4da   : > { %v150_v29 = vmul.f32 %v149_v27, %v148_v28 }
 0x4dc   : > { %v151_v30 = vadd.f32 %v203_v4, %v150_v29  }
 0x4de   : > { %v345_v4 = vmov %v151_v30  ;;  %153 = vst.msk [vmem:[%s344_s6] sm:$0x7] (%p34_p0), %vm152_vm1, %v151_v30 }

</bundles_post_ra>
